<compile_context>
chip_gen: v7x
topology: tpu7x:2x2x1
jax: 0.10.0
libtpu: 0.0.40
codegen_flags: <defaults>
</compile_context>

<pallas_src>
import functools

import jax
import jax.numpy as jnp
from jax.experimental import pallas as pl
from jax.experimental.pallas import tpu as pltpu


def _psp_loss_kernel(main_ref, aux_ref, tgt_ref, out_ref, *, aux_weight, hw):
    """Write per-(batch-block, pixel-tile) [CE_main + aux_weight*CE_aux] partials."""
    i = pl.program_id(1)
    bn, num_classes, tile = main_ref.shape

    t = tgt_ref[...]                                           # (bn, 1, tile) int32

    # One-hot row mask: built once per grid step and shared by both logits
    # streams (JAX does not CSE broadcast_in_dim).
    rows = jax.lax.broadcasted_iota(jnp.int32, (bn, num_classes, tile), 1)
    onehot = rows == t                                         # (bn, C, tile) bool

    # Mask the ragged last pixel tile and ignored / out-of-range labels
    # (covers PyTorch's default ignore_index=-100, since -100 < 0).
    pix = i * tile + jax.lax.broadcasted_iota(jnp.int32, (bn, 1, tile), 2)
    valid = (pix < hw) & (t >= 0) & (t < num_classes)          # (bn, 1, tile) bool

    def ce(logits_ref):
        x = logits_ref[...]                                    # (bn, C, tile), native dtype
        xm = x - jnp.max(x, axis=1, keepdims=True)             # max/sub stay in native dtype
        # Target-logit gather reuses the shifted logits; exactly one nonzero
        # per column, so the sum is an exact select.
        tgt = jnp.sum(jnp.where(onehot, xm, 0), axis=1,
                      keepdims=True).astype(jnp.float32)       # (bn, 1, tile) f32
        sumexp = jnp.sum(jnp.exp(xm.astype(jnp.float32)),
                         axis=1, keepdims=True)                # f32 exp / accumulate
        return jnp.log(sumexp) - tgt                           # shifted-lse - shifted-target

    combined = ce(main_ref) + aux_weight * ce(aux_ref)         # (bn, 1, tile) f32
    # Select (never multiplicative masking) so NaN garbage in the un-DMA'd part
    # of a ragged tile cannot propagate.
    out_ref[...] = jnp.where(valid, combined, 0.0)


def _largest_divisor_leq(n, cap):
    cap = int(max(1, min(n, cap)))
    for d in range(cap, 0, -1):
        if n % d == 0:
            return d
    return 1


def psp_loss(out_main, out_aux, targets, aux_weight=0.4, tile_hw=8192):
    """out_main/out_aux: (N, C, H, W) float logits; targets: (N, H, W) int labels."""
    N, C, H, W = out_main.shape
    hw = H * W
    itemsize = jnp.dtype(out_main.dtype).itemsize

    # Generation-aware VMEM budget (v5e/v6e: 128 MiB phys -> 64 MiB scoped;
    # v7x: 64 MiB phys -> 32 MiB scoped).
    try:
        vmem_cap = int(pltpu.get_tpu_info().vmem_capacity_bytes)
    except Exception:
        vmem_cap = 128 * 1024 * 1024
    vmem_limit = min(vmem_cap // 2, 64 * 1024 * 1024)
    input_budget = (vmem_limit * 3) // 4   # 2 logits streams x 2 pipeline buffers

    # Pixel-tile size: as large as requested / budget allows, lane-aligned.
    tile_cap = max(128, (input_budget // (4 * C * itemsize)) // 128 * 128)
    tile_req = max(128, (min(int(tile_hw), tile_cap) // 128) * 128)
    if hw <= tile_req:
        tile = hw                       # full-extent last-dim block (no 128 constraint)
        num_tiles = 1
    else:
        tile = tile_req
        num_tiles = pl.cdiv(hw, tile)   # ragged last tile masked in-kernel

    # Batch-block small-hw problems so each grid step still moves >= ~1 MiB.
    if num_tiles == 1 and N > 1:
        per_b_bytes = 2 * C * tile * itemsize
        bn_want = -(-(1 << 20) // per_b_bytes)                 # ceil(1 MiB / per-batch bytes)
        bn_budget = max(1, input_budget // (4 * C * tile * itemsize))
        bn_grid = max(1, N // 2)        # keep >= 2 grid steps for megacore when possible
        bn = _largest_divisor_leq(N, min(bn_want, bn_budget, bn_grid))
    else:
        bn = 1

    # Free views of the native NCHW layout -- no extra HBM pass.
    lm = out_main.reshape(N, C, hw)
    la = out_aux.reshape(N, C, hw)
    tg = targets.reshape(N, 1, hw).astype(jnp.int32)

    grid = (N // bn, num_tiles)
    kernel = functools.partial(_psp_loss_kernel,
                               aux_weight=float(aux_weight), hw=hw)

    cost = pl.CostEstimate(
        flops=int(2 * 6 * N * hw * C),
        transcendentals=int(2 * N * hw * (C + 1)),
        bytes_accessed=int(2 * N * C * hw * itemsize + N * hw * 4
                           + N * num_tiles * tile * 4),
    )

    partials = pl.pallas_call(
        kernel,
        out_shape=jax.ShapeDtypeStruct((N, 1, num_tiles * tile), jnp.float32),
        grid_spec=pltpu.PrefetchScalarGridSpec(
            num_scalar_prefetch=0,
            grid=grid,
            in_specs=[
                pl.BlockSpec((bn, C, tile), lambda n, i: (n, 0, i)),
                pl.BlockSpec((bn, C, tile), lambda n, i: (n, 0, i)),
                pl.BlockSpec((bn, 1, tile), lambda n, i: (n, 0, i)),
            ],
            out_specs=pl.BlockSpec((bn, 1, tile), lambda n, i: (n, 0, i)),
        ),
        compiler_params=pltpu.CompilerParams(
            dimension_semantics=("parallel", "parallel"),
            vmem_limit_bytes=int(vmem_limit),
        ),
        cost_estimate=cost,
    )(lm, la, tg)

    total = jnp.sum(partials)
    # Mean over valid pixels (== all pixels when no labels are ignored, matching
    # F.cross_entropy(reduction='mean'); also handles ignore_index=-100).
    # TODO(synk): labels >= C are masked out here, whereas PyTorch would raise.
    n_valid = jnp.sum((targets >= 0) & (targets < C))
    return total / jnp.maximum(n_valid, 1).astype(jnp.float32)


def psp_loss_ref(out_main, out_aux, targets, aux_weight=0.4):
    """Pure-JAX reference matching F.cross_entropy(reduction='mean') for valid labels."""
    def ce(logits):
        N, C, H, W = logits.shape
        x = jnp.transpose(logits, (0, 2, 3, 1)).reshape(-1, C).astype(jnp.float32)
        t = targets.reshape(-1)
        lse = jax.nn.logsumexp(x, axis=-1)
        tl = jnp.take_along_axis(x, t[:, None], axis=-1)[:, 0]
        return jnp.mean(lse - tl)
    return ce(out_main) + aux_weight * ce(out_aux)


if __name__ == "__main__":
    key = jax.random.PRNGKey(0)
    k1, k2, k3 = jax.random.split(key, 3)

    N, C, H, W = 2, 4, 16, 16  # small shapes consistent with PSPNet outputs
    out_main = jax.random.normal(k1, (N, C, H, W), dtype=jnp.float32)
    out_aux = jax.random.normal(k2, (N, C, H, W), dtype=jnp.float32)
    targets = jax.random.randint(k3, (N, H, W), 0, C, dtype=jnp.int32)

    ref = jax.block_until_ready(psp_loss_ref(out_main, out_aux, targets))

    # 1) Single-tile path (tile == H*W, bn == 1).
    loss = jax.block_until_ready(psp_loss(out_main, out_aux, targets))
    assert jnp.allclose(loss, ref, rtol=1e-5, atol=1e-5), (loss, ref)

    # 2) Multi-tile path with a ragged last tile (hw=324 -> 3 tiles of 128).
    H2 = W2 = 18
    om2 = jax.random.normal(k1, (N, C, H2, W2), dtype=jnp.float32)
    oa2 = jax.random.normal(k2, (N, C, H2, W2), dtype=jnp.float32)
    tg2 = jax.random.randint(k3, (N, H2, W2), 0, C, dtype=jnp.int32)
    ref2 = psp_loss_ref(om2, oa2, tg2)
    loss2 = jax.block_until_ready(psp_loss(om2, oa2, tg2, tile_hw=128))
    assert jnp.allclose(loss2, ref2, rtol=1e-5, atol=1e-5), (loss2, ref2)

    # 3) Batch-blocked path (small hw, bn > 1 per grid step).
    N3 = 8
    om3 = jax.random.normal(k1, (N3, C, H, W), dtype=jnp.float32)
    oa3 = jax.random.normal(k2, (N3, C, H, W), dtype=jnp.float32)
    tg3 = jax.random.randint(k3, (N3, H, W), 0, C, dtype=jnp.int32)
    ref3 = psp_loss_ref(om3, oa3, tg3)
    loss3 = jax.block_until_ready(psp_loss(om3, oa3, tg3))
    assert jnp.allclose(loss3, ref3, rtol=1e-5, atol=1e-5), (loss3, ref3)

    # 4) bf16 logits path (native-dtype max/sub/select, f32 exp/accumulate).
    om4 = out_main.astype(jnp.bfloat16)
    oa4 = out_aux.astype(jnp.bfloat16)
    ref4 = psp_loss_ref(om4, oa4, targets)
    loss4 = jax.block_until_ready(psp_loss(om4, oa4, targets))
    assert abs(float(loss4) - float(ref4)) < 5e-2, (loss4, ref4)

    print("KERNEL_OK")
</pallas_src>

<mosaic_0001>
module attributes {stable_mosaic.version = 11 : i64} {
  func.func @_psp_loss_kernel(%arg0: i32, %arg1: i32, %arg2: memref<1x4x256xf32, #tpu.memory_space<vmem>>, %arg3: memref<1x4x256xf32, #tpu.memory_space<vmem>>, %arg4: memref<1x1x256xi32, #tpu.memory_space<vmem>>, %arg5: memref<1x1x256xf32, #tpu.memory_space<vmem>>) attributes {dimension_semantics = [#tpu.dimension_semantics<parallel>, #tpu.dimension_semantics<parallel>], iteration_bounds = array<i64: 2, 1>, scalar_prefetch = 0 : i64, scratch_operands = 0 : i64, tpu.core_type = #tpu.core_type<tc>, window_params = [{transform_indices = @transform_0, window_bounds = array<i64: 1, 4, 256>}, {transform_indices = @transform_1, window_bounds = array<i64: 1, 4, 256>}, {transform_indices = @transform_2, window_bounds = array<i64: 1, 1, 256>}, {transform_indices = @transform_3, window_bounds = array<i64: 1, 1, 256>}]} {
    %c0 = arith.constant 0 : index
    %c0_0 = arith.constant 0 : index
    %c0_1 = arith.constant 0 : index
    %0 = vector.load %arg4[%c0, %c0_0, %c0_1] : memref<1x1x256xi32, #tpu.memory_space<vmem>>, vector<1x1x256xi32>
    %1 = tpu.iota {dimensions = array<i32: 1>} : vector<1x4x256xi32>
    %2 = vector.broadcast %0 : vector<1x1x256xi32> to vector<1x4x256xi32>
    %3 = arith.cmpi eq, %1, %2 : vector<1x4x256xi32>
    %c256_i32 = arith.constant 256 : i32
    %4 = arith.muli %arg1, %c256_i32 : i32
    %5 = tpu.iota {dimensions = array<i32: 2>} : vector<1x1x256xi32>
    %6 = vector.broadcast %4 : i32 to vector<1x1x256xi32>
    %7 = arith.addi %6, %5 : vector<1x1x256xi32>
    %c256_i32_2 = arith.constant 256 : i32
    %8 = vector.broadcast %c256_i32_2 : i32 to vector<1x1x256xi32>
    %9 = arith.cmpi slt, %7, %8 : vector<1x1x256xi32>
    %c0_i32 = arith.constant 0 : i32
    %10 = vector.broadcast %c0_i32 : i32 to vector<1x1x256xi32>
    %11 = arith.cmpi sge, %0, %10 : vector<1x1x256xi32>
    %12 = arith.andi %9, %11 : vector<1x1x256xi1>
    %c4_i32 = arith.constant 4 : i32
    %13 = vector.broadcast %c4_i32 : i32 to vector<1x1x256xi32>
    %14 = arith.cmpi slt, %0, %13 : vector<1x1x256xi32>
    %15 = arith.andi %12, %14 : vector<1x1x256xi1>
    %c0_3 = arith.constant 0 : index
    %c0_4 = arith.constant 0 : index
    %c0_5 = arith.constant 0 : index
    %16 = vector.load %arg2[%c0_3, %c0_4, %c0_5] : memref<1x4x256xf32, #tpu.memory_space<vmem>>, vector<1x4x256xf32>
    %cst = arith.constant dense<0xFF800000> : vector<1x256xf32>
    %17 = vector.multi_reduction <maximumf>, %16, %cst [1] : vector<1x4x256xf32> to vector<1x256xf32>
    %18 = vector.shape_cast %17 : vector<1x256xf32> to vector<1x1x256xf32>
    %19 = vector.broadcast %18 : vector<1x1x256xf32> to vector<1x4x256xf32>
    %20 = arith.subf %16, %19 : vector<1x4x256xf32>
    %c0_i32_6 = arith.constant 0 : i32
    %21 = arith.sitofp %c0_i32_6 : i32 to f32
    %22 = vector.broadcast %21 : f32 to vector<1x4x256xf32>
    %23 = arith.select %3, %20, %22 : vector<1x4x256xi1>, vector<1x4x256xf32>
    %cst_7 = arith.constant dense<0.000000e+00> : vector<1x256xf32>
    %24 = vector.multi_reduction <add>, %23, %cst_7 [1] : vector<1x4x256xf32> to vector<1x256xf32>
    %25 = vector.shape_cast %24 : vector<1x256xf32> to vector<1x1x256xf32>
    %26 = math.exp %20 : vector<1x4x256xf32>
    %cst_8 = arith.constant dense<0.000000e+00> : vector<1x256xf32>
    %27 = vector.multi_reduction <add>, %26, %cst_8 [1] : vector<1x4x256xf32> to vector<1x256xf32>
    %28 = vector.shape_cast %27 : vector<1x256xf32> to vector<1x1x256xf32>
    %29 = math.log %28 : vector<1x1x256xf32>
    %30 = arith.subf %29, %25 : vector<1x1x256xf32>
    %c0_9 = arith.constant 0 : index
    %c0_10 = arith.constant 0 : index
    %c0_11 = arith.constant 0 : index
    %31 = vector.load %arg3[%c0_9, %c0_10, %c0_11] : memref<1x4x256xf32, #tpu.memory_space<vmem>>, vector<1x4x256xf32>
    %cst_12 = arith.constant dense<0xFF800000> : vector<1x256xf32>
    %32 = vector.multi_reduction <maximumf>, %31, %cst_12 [1] : vector<1x4x256xf32> to vector<1x256xf32>
    %33 = vector.shape_cast %32 : vector<1x256xf32> to vector<1x1x256xf32>
    %34 = vector.broadcast %33 : vector<1x1x256xf32> to vector<1x4x256xf32>
    %35 = arith.subf %31, %34 : vector<1x4x256xf32>
    %c0_i32_13 = arith.constant 0 : i32
    %36 = arith.sitofp %c0_i32_13 : i32 to f32
    %37 = vector.broadcast %36 : f32 to vector<1x4x256xf32>
    %38 = arith.select %3, %35, %37 : vector<1x4x256xi1>, vector<1x4x256xf32>
    %cst_14 = arith.constant dense<0.000000e+00> : vector<1x256xf32>
    %39 = vector.multi_reduction <add>, %38, %cst_14 [1] : vector<1x4x256xf32> to vector<1x256xf32>
    %40 = vector.shape_cast %39 : vector<1x256xf32> to vector<1x1x256xf32>
    %41 = math.exp %35 : vector<1x4x256xf32>
    %cst_15 = arith.constant dense<0.000000e+00> : vector<1x256xf32>
    %42 = vector.multi_reduction <add>, %41, %cst_15 [1] : vector<1x4x256xf32> to vector<1x256xf32>
    %43 = vector.shape_cast %42 : vector<1x256xf32> to vector<1x1x256xf32>
    %44 = math.log %43 : vector<1x1x256xf32>
    %45 = arith.subf %44, %40 : vector<1x1x256xf32>
    %cst_16 = arith.constant 4.000000e-01 : f32
    %46 = vector.broadcast %cst_16 : f32 to vector<1x1x256xf32>
    %47 = arith.mulf %46, %45 : vector<1x1x256xf32>
    %48 = arith.addf %30, %47 : vector<1x1x256xf32>
    %cst_17 = arith.constant 0.000000e+00 : f32
    %49 = vector.broadcast %cst_17 : f32 to vector<1x1x256xf32>
    %50 = arith.select %15, %48, %49 : vector<1x1x256xi1>, vector<1x1x256xf32>
    %c0_18 = arith.constant 0 : index
    %c0_19 = arith.constant 0 : index
    %c0_20 = arith.constant 0 : index
    %51 = vector.load %arg5[%c0_18, %c0_19, %c0_20] : memref<1x1x256xf32, #tpu.memory_space<vmem>>, vector<1x1x256xf32>
    tpu.vector_store %arg5[%c0_18, %c0_19, %c0_20], %50 {strides = array<i32>} : memref<1x1x256xf32, #tpu.memory_space<vmem>>, vector<1x1x256xf32>,
    return
  }
  func.func @transform_0(%arg0: i32, %arg1: i32) -> (i32, i32, i32) {
    %c0_i32 = arith.constant 0 : i32
    %c0_i32_0 = arith.constant 0 : i32
    return %arg0, %c0_i32, %arg1 : i32, i32, i32
  }
  func.func @transform_1(%arg0: i32, %arg1: i32) -> (i32, i32, i32) {
    %c0_i32 = arith.constant 0 : i32
    %c0_i32_0 = arith.constant 0 : i32
    return %arg0, %c0_i32, %arg1 : i32, i32, i32
  }
  func.func @transform_2(%arg0: i32, %arg1: i32) -> (i32, i32, i32) {
    %c0_i32 = arith.constant 0 : i32
    %c0_i32_0 = arith.constant 0 : i32
    return %arg0, %c0_i32, %arg1 : i32, i32, i32
  }
  func.func @transform_3(%arg0: i32, %arg1: i32) -> (i32, i32, i32) {
    %c0_i32 = arith.constant 0 : i32
    %c0_i32_0 = arith.constant 0 : i32
    return %arg0, %c0_i32, %arg1 : i32, i32, i32
  }
}

</mosaic_0001>

<bundles_post_ra>
// kernel: tpu_custom_call.1
= control target key start
LH: loop header
LB: loop body
LE: loop exit
PB: predicated region body
PF: predicated region fallthrough
CT: control target
= control target key end

     0   :  { %s1282_s0 = inlined_call_operand.hbm [shape: f32[2,4,256], index: 0, kind: input, shape index: {}]   ;;  %s1283_s1 = inlined_call_operand.hbm [shape: f32[2,4,256], index: 1, kind: input, shape index: {}]   ;;  %s1284_s2 = inlined_call_operand.hbm [shape: s32[2,1,256], index: 2, kind: input, shape index: {}]   ;;  %s1285_s3 = inlined_call_operand.hbm [shape: f32[2,1,256], index: 3, kind: output, shape index: {}]  }
   0x1   :  { %1292 = sst [smem:[#allocation15_spill]] %s1282_s0 }
   0x2   :  { %1293 = sst [smem:[#allocation16_spill]] %s1283_s1 }
   0x3   :  { %8 = vsyncpa [#allocation3], 0 }
   0x4   :  { %10 = vsyncpa [#allocation3 + $0x1], 0 }
   0x5   :  { %11 = vsyncpa [#allocation6], 0 }
   0x6   :  { %13 = vsyncpa [#allocation6 + $0x1], 0 }
   0x7   :  { %14 = vsyncpa [#allocation4], 0 }
   0x8   :  { %16 = vsyncpa [#allocation4 + $0x1], 0  ;;  %s973_s12 = smov 0   ;;  %s975_s13 = smov 0  }
   0x9   :  { %s977_s14 = smov 0   ;;  %s979_s15 = smov 0  }
   0xa   :  { %s981_s16 = smov 0   ;;  %s983_s17 = smov 0  }
   0xb LB: > { %1294 = sst [smem:[#allocation12_spill]] %s933_s14  ;;  %s1004_s18 = sadd.s32 4294967295, %s945_s17   ;;  %s945_s17 = sphi %s983_s17, %s22_s17   ;;  %s941_s16 = sphi %s981_s16, %s1328_s16   ;;  %s937_s15 = sphi %s979_s15, %s1327_s15   ;;  %s933_s14 = sphi %s977_s14, %s1323_s14   ;;  %s929_s13 = sphi %s975_s13, %s1326_s13   ;;  %s925_s12 = sphi %s973_s12, %s1325_s12  }
   0xc   : > { %s655_s19 = sadd.s32 4294967294, %s945_s17   ;;  %s34_s20 = sadd.s32 1, %s941_s16 }
   0xd   : > { %s43_s21 = sadd.s32 1, %s933_s14  ;;  %p36_p0 = scmp.ge.s32.totalorder %s34_s20, 2 }
   0xe   : > { %p50_p1 = scmp.ne.s32.totalorder %s933_s14, %s929_s13  ;;  %p51_p2 = scmp.eq.s32.totalorder %s945_s17, 0 }
   0xf   : > { %p56_p3 = scmp.ne.s32.totalorder %s929_s13, %s925_s12  ;;  %s1330_s20 = smov (%p36_p0, %s34_s20), 0 }
  0x10   : > { %1295 = sst [smem:[#allocation13_spill]] %s1330_s20  ;;  %p1016_p4 = por %p51_p2, %p50_p1 }
  0x11   : > { %p57_p5 = scmp.eq.s32.totalorder %s1004_s18, 0  ;;  %s38_s23 = ssub.s32 %s941_s16, %s1330_s20 }
  0x12   : > { %p138_p6 = scmp.eq.s32.totalorder %s1004_s18, 1  ;;  %p41_p7 = scmp.eq.s32.totalorder %s38_s23, 0 }
  0x13   : > { %p1024_p8 = por %p57_p5, %p56_p3  ;;  %p144_p10 = scmp.eq.s32.totalorder %s655_s19, 1 }
  0x14   : > { %p1028_p9 = por %p138_p6, %p50_p1  ;;  %p703_p13 = scmp.lt.s32.totalorder %s945_s17, 2 }
  0x15   : > { %s1297_s24 = scalar_select %p1024_p8, 1, 0 }
  0x16   : > { %s1298_s25 = scalar_select %p1028_p9, 1, 0 }
  0x17   : > { %s1033_s26 = scalar_select %p41_p7, %s933_s14, %s43_s21  }
  0x18   : > { %p1035_p11 = por %p144_p10, %p56_p3  ;;  %s1042_s28 = sand.u32 1, %s933_s14  }
  0x19   : > { %1299 = sst [smem:[#allocation14_spill]] %s1033_s26  ;;  %s658_s29 = sshll.u32 %s1042_s28, 3 }
  0x1a   : > { %s1300_s27 = scalar_select %p1035_p11, 1, 0 }
  0x1b   : > { %s677_s30 = sshll.u32 %s941_s16, 7  ;;  %p1048_p0 = pnand %p703_p13, %p1016_p4 }
  0x1c   : > { %s185_s5 = sand.u32 1, %s945_s17   ;;  %s1302_s1 = sld [smem:[#allocation16_spill]] }
  0x1d   : > { %s1301_s4 = scalar_select %p1048_p0, 1, 0 }
  0x1e   : > { %s189_s9 = scalar_lea.vmem [#allocation5], %s658_s29  ;;  %s1066_s11 = scalar_lea.sflag [#allocation6], %s185_s5 }
  0x1f   : > { %s199_s10 = sshll.u32 %s189_s9, 4  ;;  %p1072_p4 = pneg %p1048_p0  ;;  %s1063_s10 = int_to_ptr.vmem [resolvable:$true] %s199_s10 }
  0x22   : > { %s1058_s8 = scalar_lea.hbm %s1302_s1, %s677_s30  ;;  %s774_s6 = scalar_lea.hbm %s1302_s1, 256 }
  0x23   : > { %s769_s19 = scalar_lea.hbm %s1058_s8, 128  ;;  %p775_p7 = scmp.lt.u32.totalorder %s1058_s8, %s1302_s1 }
  0x24   : > { %p770_p3 = scmp.ne.s32.totalorder %s1058_s8, %s769_s19  ;;  %p776_p10 = scmp.lt.u32.totalorder %s774_s6, %s769_s19 }
  0x25   : > { %p778_p12 = scmp.lt.u32.totalorder %s769_s19, %s1058_s8 }
  0x26   : > { %p772_p5 = pnand %p1072_p4, %p770_p3  ;;  %p777_p13 = por %p776_p10, %p775_p7 }
  0x28   : > { %p773_p6 = pneg %p772_p5  ;;  %p779_p1 = por %p778_p12, %p777_p13 }
  0x2a   : > { %p780_p2 = pnand %p779_p1, %p773_p6 }
  0x2c   : > { %783 = shalt.err (!%p780_p2)
}
  0x2d   : > { %s784_s5 = scalar_lea.vmem %s1063_s10, 128  ;;  %s947_s22 = smov [#allocation5]  }
  0x2e   : > { %p785_p3 = scmp.ne.s32.totalorder %s1063_s10, %s784_s5  ;;  %s789_s23 = sshll.u32 %s947_s22, 4  ;;  %s790_s23 = int_to_ptr.vmem [resolvable:$false] %s789_s23 }
  0x2f   : > { %s791_s7 = scalar_lea.vmem %s790_s23, 256  ;;  %p792_p9 = scmp.lt.s32.totalorder %s1063_s10, %s790_s23 }
  0x30   : > { %p787_p5 = pnand %p785_p3, %p1072_p4  ;;  %p793_p8 = scmp.lt.s32.totalorder %s791_s7, %s784_s5 }
  0x32   : > { %p788_p11 = pneg %p787_p5  ;;  %p794_p7 = por %p793_p8, %p792_p9 }
  0x34   : > { %p795_p10 = pnand %p794_p7, %p788_p11 }
  0x36   : > { %798 = shalt.err (!%p795_p10)
}
  0x37   : > { %695 = dma.hbm_to_vmem [thread:$0]  (!%p1048_p0), %s1058_s8, 128, %s1063_s10, %s1066_s11  }
  0x38   : > { %p1304_p12 = scmp.lt.s32.totalorder %s945_s17, 3  ;;  %p1305_p1 = scmp.ge.s32.totalorder %s945_s17, 1 }
  0x39   : > { %s1307_s0 = sld [smem:[#allocation15_spill]]  ;;  %s168_s22 = scalar_lea.vmem [#allocation2], %s658_s29 }
  0x3a   : > { %p1100_p2 = pnand %p1305_p1, %p1304_p12  ;;  %s178_s23 = sshll.u32 %s168_s22, 4  ;;  %s179_s23 = int_to_ptr.vmem [resolvable:$true] %s178_s23 }
  0x3b   : > { %s165_s10 = scalar_lea.sflag [#allocation3], %s1042_s28 }
  0x3c   : > { %s1306_s19 = scalar_select %p1100_p2, 1, 0 }
  0x3f   : > { %s1109_s5 = scalar_lea.hbm %s1307_s0, %s677_s30  ;;  %s804_s30 = scalar_lea.hbm %s1307_s0, 256 }
  0x40   : > { %s799_s7 = scalar_lea.hbm %s1109_s5, 128  ;;  %p805_p6 = scmp.lt.u32.totalorder %s1109_s5, %s1307_s0 }
  0x41   : > { %p800_p8 = scmp.ne.s32.totalorder %s1109_s5, %s799_s7  ;;  %p806_p13 = scmp.lt.u32.totalorder %s804_s30, %s799_s7 }
  0x42   : > { %p808_p5 = scmp.lt.u32.totalorder %s799_s7, %s1109_s5 }
  0x43   : > { %p802_p9 = pnand %p800_p8, %p1072_p4  ;;  %p807_p3 = por %p806_p13, %p805_p6 }
  0x45   : > { %p803_p11 = pneg %p802_p9  ;;  %p809_p7 = por %p808_p5, %p807_p3 }
  0x47   : > { %p810_p10 = pnand %p809_p7, %p803_p11 }
  0x49   : > { %813 = shalt.err (!%p810_p10)
}
  0x4a   : > { %s814_s29 = scalar_lea.vmem %s179_s23, 128  ;;  %s948_s22 = smov [#allocation2]  }
  0x4b   : > { %p815_p12 = scmp.ne.s32.totalorder %s179_s23, %s814_s29  ;;  %s819_s8 = sshll.u32 %s948_s22, 4  ;;  %s820_s8 = int_to_ptr.vmem [resolvable:$false] %s819_s8 }
  0x4c   : > { %s821_s1 = scalar_lea.vmem %s820_s8, 256  ;;  %p822_p9 = scmp.lt.s32.totalorder %s179_s23, %s820_s8 }
  0x4d   : > { %p817_p1 = pnand %p815_p12, %p1072_p4  ;;  %p823_p2 = scmp.lt.s32.totalorder %s821_s1, %s814_s29 }
  0x4f   : > { %p818_p8 = pneg %p817_p1  ;;  %p824_p0 = por %p823_p2, %p822_p9 }
  0x51   : > { %p825_p6 = pnand %p824_p0, %p818_p8 }
  0x53   : > { %828 = shalt.err (!%p825_p6)
}
  0x54   : > { %p1308_p13 = scmp.ne.s32.totalorder %s1301_s4, 0  ;;  %s679_s20 = sshll.u32 %s941_s16, 5 }
  0x55   : > { %s1309_s7 = sshll.u32 %s1042_s28, 1  ;;  %s218_s0 = scalar_lea.hbm %s1284_s2, %s679_s20 }
  0x56   : > { %692 = dma.hbm_to_vmem [thread:$0]  (!%p1308_p13), %s1109_s5, 128, %s179_s23, %s165_s10  }
  0x57   : > { %s210_s30 = scalar_lea.vmem [#allocation7], %s1309_s7  ;;  %s829_s8 = scalar_lea.hbm %s218_s0, 32 }
  0x58   : > { %s220_s6 = sshll.u32 %s210_s30, 4  ;;  %p830_p2 = scmp.ne.s32.totalorder %s218_s0, %s829_s8  ;;  %s221_s6 = int_to_ptr.vmem [resolvable:$true] %s220_s6 }
  0x59   : > { %s834_s26 = scalar_lea.hbm %s1284_s2, 64  ;;  %p835_p3 = scmp.lt.u32.totalorder %s218_s0, %s1284_s2 }
  0x5a   : > { %p832_p0 = pnand %p830_p2, %p1072_p4  ;;  %p836_p5 = scmp.lt.u32.totalorder %s834_s26, %s829_s8 }
  0x5b   : > { %p838_p10 = scmp.lt.u32.totalorder %s829_s8, %s218_s0 }
  0x5c   : > { %p833_p11 = pneg %p832_p0  ;;  %p837_p7 = por %p836_p5, %p835_p3 }
  0x5e   : > { %p839_p12 = por %p838_p10, %p837_p7 }
  0x60   : > { %p840_p1 = pnand %p839_p12, %p833_p11 }
  0x62   : > { %843 = shalt.err (!%p840_p1)
}
  0x63   : > { %s844_s28 = scalar_lea.vmem %s221_s6, 32  ;;  %s949_s23 = smov [#allocation7]  }
  0x64   : > { %p845_p8 = scmp.ne.s32.totalorder %s221_s6, %s844_s28  ;;  %s849_s10 = sshll.u32 %s949_s23, 4  ;;  %s850_s10 = int_to_ptr.vmem [resolvable:$false] %s849_s10 }
  0x65   : > { %s851_s20 = scalar_lea.vmem %s850_s10, 64  ;;  %p852_p2 = scmp.lt.s32.totalorder %s221_s6, %s850_s10 }
  0x66   : > { %p847_p9 = pnand %p845_p8, %p1072_p4  ;;  %p853_p0 = scmp.lt.s32.totalorder %s851_s20, %s844_s28 }
  0x68   : > { %p848_p6 = pneg %p847_p9  ;;  %p854_p13 = por %p853_p0, %p852_p2 }
  0x6a   : > { %p855_p3 = pnand %p854_p13, %p848_p6 }
  0x6c   : > { %858 = shalt.err (!%p855_p3)
}
  0x6d   : > { %p1310_p5 = scmp.ne.s32.totalorder %s1301_s4, 0  ;;  %p1311_p11 = scmp.ne.s32.totalorder %s1306_s19, 0 }
  0x6e   : > { %s1154_s14 = sand.u32 (!%p1311_p11), 1, %s929_s13   ;;  %p1312_p4 = scmp.ne.s32.totalorder (!%p1311_p11), %s1297_s24, 0 }
  0x6f   : > { %698 = dma.hbm_to_vmem [thread:$0]  (!%p1310_p5), %s218_s0, 32, %s221_s6, %s1066_s11  }
  0x70   : > { %229 = sbr.rel (%p1311_p11) target bundleno = 213 (0xd5), region = 32  ;;  %s668_s26 = sshll.u32 (!%p1311_p11), %s1154_s14, 3 }
  0x71   : > { %s232_s21 = scalar_lea.sflag (!%p1311_p11), [#allocation3], %s1154_s14  ;;  %s235_s7 = scalar_lea.vmem (!%p1311_p11), [#allocation2], %s668_s26 }
  0x77   : > { %912 = dma.done.wait (%p1312_p4), %s232_s21, 128  }
  0x78   : > { %914 = vsyncadd (%p1312_p4), %s232_s21, 4294967168  ;;  %s240_s0 = sand.u32 1, %s1004_s18   ;;  %s244_s11 = scalar_lea.vmem [#allocation5], %s668_s26 }
  0x79   : > { %s241_s4 = scalar_lea.sflag [#allocation6], %s240_s0 }
  0x7a   : > { %916 = dma.done.wait (%p1312_p4), %s241_s4, 160  }
  0x7b   : > { %918 = vsyncadd (%p1312_p4), %s241_s4, 4294967136  ;;  %v340_v0 = vld [vmem:[%s235_s7] sm:$0xff]  ;;  %vm344_vm0 = vcmask 1043456   ;;  %v408_v3 = vld [vmem:[%s244_s11] sm:$0xff]  ;;  %v291_v25 = vlaneseq  ;;  %s670_s18 = sshll.u32 %s1154_s14, 1  ;;  %v950_v45 = vmov 0  }
  0x7c   : > { %v342_v1 = vcombine.high %v340_v0, %v340_v0  ;;  %v345_v2 = vsel %vm344_vm0, %v340_v0, -inf  ;;  %v410_v7 = vcombine.high %v408_v3, %v408_v3  ;;  %v412_v9 = vsel %vm344_vm0, %v408_v3, -inf  ;;  %s253_s24 = scalar_lea.vmem [#allocation7], %s670_s18  ;;  %s285_s19 = scalar_lea.vmem [#allocation8], %s670_s18 }
  0x7d   : > { %v346_v4 = vrot.slane %v345_v2, 4  ;;  %v413_v11 = vrot.slane %v412_v9, 4  ;;  %v1173_v33 = vshrl.u32 %v291_v25, 7  ;;  %v1180_v40 = vld [vmem:[%s253_s24] sm:$0x3]  ;;  %s521_s30 = sshll.u32 %s285_s19, 4  ;;  %s1230_s30 = int_to_ptr.vmem [resolvable:$true] %s521_s30 }
  0x7e   : > { %v352_v5 = vsel %vm344_vm0, %v342_v1, -inf  ;;  %v419_v12 = vsel %vm344_vm0, %v410_v7, -inf  ;;  %vm312_vm3 = vcmp.ge.s32.totalorder %v1180_v40, 0  ;;  %vm326_vm4 = vcmp.lt.s32.totalorder %v1180_v40, 4  ;;  %s680_s6 = sshll.u32 %s937_s15, 5  ;;  %s505_s29 = scalar_lea.sflag [#allocation4], %s1154_s14 }
  0x7f   : > { %v353_v6 = vrot.slane %v352_v5, 4  ;;  %v347_v8 = vmax.f32 %v345_v2, %v346_v4  ;;  %v420_v14 = vrot.slane %v419_v12, 4  ;;  %v414_v16 = vmax.f32 %v412_v9, %v413_v11  ;;  %s1235_s8 = scalar_lea.hbm %s1285_s3, %s680_s6  ;;  %s859_s1 = scalar_lea.vmem %s1230_s30, 32 }
  0x80   : > { %v1176_v38 = vsub.s32 0, %v1173_v33  ;;  %v1183_v41 = vsub.s32 1, %v1173_v33  ;;  %vm501_vm11 = vcmp.lt.s32.totalorder %v291_v25, 256  ;;  %p860_p13 = scmp.ne.s32.totalorder %s1230_s30, %s859_s1  ;;  %p1319_p7 = scmp.ne.s32.totalorder %s1298_s25, 0 }
  0x81   : > { %v354_v10 = vmax.f32 %v352_v5, %v353_v6  ;;  %v348_v13 = vrot.slane %v347_v8, 2  ;;  %v421_v18 = vmax.f32 %v419_v12, %v420_v14  ;;  %v415_v20 = vrot.slane %v414_v16, 2  ;;  %s952_s15 = smov [#allocation8]  }
  0x82   : > { %v296_v43 = vrot.slane %v1180_v40, %v1176_v38  ;;  %v300_v44 = vrot.slane %v1180_v40, %v1183_v41  ;;  %p861_p10 = pnand %p860_p13, %p1319_p7  ;;  %s863_s5 = sshll.u32 %s952_s15, 4  ;;  %s864_s5 = int_to_ptr.vmem [resolvable:$false] %s863_s5 }
  0x83   : > { %v355_v15 = vrot.slane %v354_v10, 2  ;;  %v349_v17 = vmax.f32 %v347_v8, %v348_v13  ;;  %v422_v22 = vrot.slane %v421_v18, 2  ;;  %v416_v24 = vmax.f32 %v414_v16, %v415_v20  ;;  %s865_s28 = scalar_lea.vmem %s864_s5, 64  ;;  %p866_p1 = scmp.lt.s32.totalorder %s1230_s30, %s864_s5 }
  0x84   : > { %vm1190_vm1 = vcmp.eq.s32.totalorder %v1173_v33, %v296_v43  ;;  %vm302_vm2 = vcmp.eq.s32.totalorder %v1173_v33, %v300_v44  ;;  %p862_p12 = pneg %p861_p10  ;;  %p867_p8 = scmp.lt.s32.totalorder %s865_s28, %s859_s1 }
  0x85   : > { %v356_v19 = vmax.f32 %v354_v10, %v355_v15  ;;  %v350_v21 = vrot.slane %v349_v17, 1  ;;  %v423_v27 = vmax.f32 %v421_v18, %v422_v22  ;;  %v417_v29 = vrot.slane %v416_v24, 1 }
  0x86   : > { %p868_p9 = por %p867_p8, %p866_p1 }
  0x87   : > { %v357_v23 = vrot.slane %v356_v19, 1  ;;  %v351_v26 = vmax.f32 %v349_v17, %v350_v21  ;;  %v424_v30 = vrot.slane %v423_v27, 1  ;;  %v418_v32 = vmax.f32 %v416_v24, %v417_v29 }
  0x88   : > { %p869_p6 = pnand %p868_p9, %p862_p12 }
  0x89   : > { %v358_v28 = vmax.f32 %v356_v19, %v357_v23  ;;  %v425_v34 = vmax.f32 %v423_v27, %v424_v30 }
  0x8b   : > { %v361_v31 = vcombine.low %v351_v26, %v358_v28  ;;  %v428_v36 = vcombine.low %v418_v32, %v425_v34 }
  0x8d   : > { %v363_v35 = vsub.f32 %v340_v0, %v361_v31  ;;  %v430_v39 = vsub.f32 %v408_v3, %v428_v36 }
  0x8f   : > { %v383_v37 = vmul.f32 1.442695, %v363_v35  ;;  %v450_v42 = vmul.f32 1.442695, %v430_v39  ;;  %v365_v46 = vcombine.high %v363_v35, %v363_v35  ;;  %v432_v47 = vcombine.high %v430_v39, %v430_v39 }
  0x90   : > { %v367_v48 = vsel %vm1190_vm1, %v363_v35, 0.0  ;;  %v434_v50 = vsel %vm1190_vm1, %v430_v39, 0.0 }
  0x91   : > { %757 = vpow2.f32 %v383_v37  ;;  %v368_v53 = vsel %vm302_vm2, %v365_v46, 0.0  ;;  %v369_v54 = vsel %vm344_vm0, %v367_v48, 0.0  ;;  %v435_v56 = vsel %vm302_vm2, %v432_v47, 0.0 }
  0x92   : > { %759 = vpow2.f32 %v450_v42  ;;  %v436_v59 = vsel %vm344_vm0, %v434_v50, 0.0  ;;  %v370_v0 = vrot.slane %v369_v54, 4  ;;  %v376_v1 = vsel %vm344_vm0, %v368_v53, 0.0 }
  0x93   : > { %v443_v2 = vsel %vm344_vm0, %v435_v56, 0.0  ;;  %v437_v6 = vrot.slane %v436_v59, 4  ;;  %v377_v10 = vrot.slane %v376_v1, 4  ;;  %v313_v46 = vsel %vm312_vm3, 1, %v950_v45 }
  0x94   : > { %v444_v13 = vrot.slane %v443_v2, 4  ;;  %v371_v16 = vadd.f32 %v370_v0, %v369_v54  ;;  %v317_v53 = vrot.slane %v313_v46, %v1176_v38  ;;  %v321_v40 = vrot.slane %v313_v46, %v1183_v41 }
  0x95   : > { %v438_v19 = vadd.f32 %v437_v6, %v436_v59  ;;  %v378_v22 = vadd.f32 %v377_v10, %v376_v1 }
  0x96   : > { %v445_v26 = vadd.f32 %v444_v13, %v443_v2  ;;  %v372_v29 = vrot.slane %v371_v16, 2  ;;  %vm1213_vm5 = vcmp.ne.s32.totalorder %v317_v53, 0  ;;  %vm323_vm7 = vcmp.ne.s32.totalorder %v321_v40, 0 }
  0x97   : > { %v439_v31 = vrot.slane %v438_v19, 2  ;;  %v379_v35 = vrot.slane %v378_v22, 2 }
  0x98   : > { %v446_v36 = vrot.slane %v445_v26, 2  ;;  %v373_v39 = vadd.f32 %v372_v29, %v371_v16 }
  0x99   : > { %v440_v42 = vadd.f32 %v439_v31, %v438_v19  ;;  %v380_v43 = vadd.f32 %v379_v35, %v378_v22 }
  0x9a   : > { %v447_v44 = vadd.f32 %v446_v36, %v445_v26  ;;  %v374_v47 = vrot.slane %v373_v39, 1 }
  0x9b   : > { %v758_v49 = vpop.eup %757  ;;  %v441_v48 = vrot.slane %v440_v42, 1 }
  0x9c   : > { %v386_v51 = vcombine.high %v758_v49, %v758_v49  ;;  %v388_v52 = vsel %vm344_vm0, %v758_v49, 0.0  ;;  %v760_v57 = vpop.eup %759  ;;  %v327_v49 = vsel %vm326_vm4, 1, %v950_v45  ;;  %v375_v56 = vadd.f32 %v374_v47, %v373_v39 }
  0x9d   : > { %v389_v55 = vrot.slane %v388_v52, 4  ;;  %v453_v62 = vcombine.high %v760_v57, %v760_v57  ;;  %v455_v63 = vsel %vm344_vm0, %v760_v57, 0.0 }
  0x9e   : > { %v395_v58 = vsel %vm344_vm0, %v386_v51, 0.0  ;;  %v456_v3 = vrot.slane %v455_v63, 4  ;;  %v381_v51 = vrot.slane %v380_v43, 1 }
  0x9f   : > { %v390_v60 = vadd.f32 %v389_v55, %v388_v52  ;;  %v396_v61 = vrot.slane %v395_v58, 4  ;;  %v462_v7 = vsel %vm344_vm0, %v453_v62, 0.0  ;;  %v448_v52 = vrot.slane %v447_v44, 1 }
  0xa0   : > { %v457_v8 = vadd.f32 %v456_v3, %v455_v63  ;;  %v463_v9 = vrot.slane %v462_v7, 4  ;;  %v331_v55 = vrot.slane %v327_v49, %v1176_v38  ;;  %v951_v3 = vmov 1966171168  }
  0xa1   : > { %v391_v4 = vrot.slane %v390_v60, 2  ;;  %v397_v5 = vadd.f32 %v396_v61, %v395_v58  ;;  %v442_v58 = vadd.f32 %v441_v48, %v440_v42  ;;  %v382_v61 = vadd.f32 %v381_v51, %v380_v43 }
  0xa2   : > { %v458_v14 = vrot.slane %v457_v8, 2  ;;  %v464_v15 = vadd.f32 %v463_v9, %v462_v7  ;;  %v449_v63 = vadd.f32 %v448_v52, %v447_v44  ;;  %vm1217_vm6 = vcmp.ne.s32.totalorder %v331_v55, 0 }
  0xa3   : > { %v392_v11 = vadd.f32 %v391_v4, %v390_v60  ;;  %v398_v12 = vrot.slane %v397_v5, 2  ;;  %v335_v60 = vrot.slane %v327_v49, %v1183_v41  ;;  %v485_v4 = vunpack.c.l.s4 %v951_v3  ;;  %vm338_vm9 = vmand %vm1213_vm5, %vm1217_vm6 }
  0xa4   : > { %v459_v20 = vadd.f32 %v458_v14, %v457_v8  ;;  %v465_v21 = vrot.slane %v464_v15, 2 }
  0xa5   : > { %v393_v17 = vrot.slane %v392_v11, 1  ;;  %v399_v18 = vadd.f32 %v398_v12, %v397_v5  ;;  %vm337_vm8 = vcmp.ne.s32.totalorder %v335_v60, 0  ;;  %v486_v10 = vunpack.c.0.s8 %v485_v4 }
  0xa6   : > { %v460_v27 = vrot.slane %v459_v20, 1  ;;  %v466_v28 = vadd.f32 %v465_v21, %v464_v15  ;;  %vm339_vm10 = vmand %vm323_vm7, %vm337_vm8 }
  0xa7   : > { %v394_v23 = vadd.f32 %v393_v17, %v392_v11  ;;  %v400_v24 = vrot.slane %v399_v18, 1  ;;  %v489_v15 = vsub.s32 %v486_v10, %v1173_v33 }
  0xa8   : > { %v461_v32 = vadd.f32 %v460_v27, %v459_v20  ;;  %v467_v34 = vrot.slane %v466_v28, 1 }
  0xa9   : > { %v401_v30 = vadd.f32 %v400_v24, %v399_v18  ;;  %761 = vlog2.f32 %v394_v23 }
  0xaa   : > { %v468_v37 = vadd.f32 %v467_v34, %v466_v28 }
  0xab   : > { %763 = vlog2.f32 %v401_v30 }
  0xac   : > { %765 = vlog2.f32 %v461_v32 }
  0xad   : > { %767 = vlog2.f32 %v468_v37 }
  0xb3   : > { %v762_v50 = vpop.eup %761 }
  0xb4   : > { %v403_v57 = vmul.f32 0.6931472, %v762_v50 }
  0xb5   : > { %v764_v54 = vpop.eup %763 }
  0xb6   : > { %v766_v59 = vpop.eup %765  ;;  %v405_v62 = vmul.f32 0.6931472, %v764_v54  ;;  %v406_v5 = vsub.f32 %v403_v57, %v375_v56 }
  0xb7   : > { %v470_v0 = vmul.f32 0.6931472, %v766_v59  ;;  %v768_v1 = vpop.eup %767 }
  0xb8   : > { %v472_v6 = vmul.f32 0.6931472, %v768_v1  ;;  %v407_v41 = vsub.f32 %v405_v62, %v382_v61 }
  0xb9   : > { %v473_v7 = vsub.f32 %v470_v0, %v442_v58 }
  0xba   : > { %v474_v8 = vsub.f32 %v472_v6, %v449_v63 }
  0xbb   : > { %v475_v9 = vmul.f32 0.4, %v473_v7 }
  0xbc   : > { %v476_v11 = vmul.f32 0.4, %v474_v8 }
  0xbd   : > { %v477_v12 = vadd.f32 %v475_v9, %v406_v5 }
  0xbe   : > { %v478_v13 = vadd.f32 %v476_v11, %v407_v41 }
  0xbf   : > { %v479_v14 = vsel %vm338_vm9, %v477_v12, 0.0 }
  0xc0   : > { %v480_v16 = vsel %vm339_vm10, %v478_v13, 0.0 }
  0xc1   : > { %v483_v17 = vcombine.low %v479_v14, %v480_v16 }
  0xc3   : > { %v490_v18 = vrot.slane %v483_v17, %v489_v15 }
  0xc5   : > { %v497_v19 = vrot.slane %v490_v18, %v489_v15 }
  0xc7   : > { %503 = vst.msk [vmem:[%s285_s19] sm:$0x3] %vm501_vm11, %v497_v19 }
  0xc8   : > { %872 = shalt.err (!%p869_p6)
}
  0xc9   : > { %s873_s23 = scalar_lea.hbm %s1235_s8, 32  ;;  %s877_s14 = scalar_lea.hbm %s1285_s3, 64 }
  0xca   : > { %p874_p2 = scmp.ne.s32.totalorder %s1235_s8, %s873_s23  ;;  %p878_p5 = scmp.lt.u32.totalorder %s1235_s8, %s1285_s3 }
  0xcb   : > { %p879_p11 = scmp.lt.u32.totalorder %s877_s14, %s873_s23  ;;  %p881_p13 = scmp.lt.u32.totalorder %s873_s23, %s1235_s8 }
  0xcc   : > { %p875_p0 = pnand %p874_p2, %p1319_p7 }
  0xcd   : > { %p880_p4 = por %p879_p11, %p878_p5 }
  0xce   : > { %p876_p3 = pneg %p875_p0 }
  0xcf   : > { %p882_p10 = por %p881_p13, %p880_p4 }
  0xd1   : > { %p883_p12 = pnand %p882_p10, %p876_p3 }
  0xd3   : > { %886 = shalt.err (!%p883_p12)
}
  0xd4   : > { %687 = dma.vmem_to_hbm [thread:$0]  (%p1319_p7), %s1230_s30, 32, %s1235_s8, %s505_s29  }
  0xd5 PF: > { %s533_s7 = sand.u32 1, %s925_s12   ;;  %p1320_p1 = scmp.ne.s32.totalorder %s1300_s27, 0 }
  0xd6   : > { %p1321_p8 = scmp.ge.s32.totalorder %s945_s17, 2  ;;  %s534_s0 = scalar_lea.sflag [#allocation4], %s533_s7 }
  0xd8   : > { %p700_p9 = pnand %p1321_p8, %p1320_p1 }
  0xda   : > { %920 = dma.done.wait (!%p700_p9), %s534_s0, 32  }
  0xdb   : > { %922 = vsyncadd (!%p700_p9), %s534_s0, 4294967264  ;;  %s22_s17 = sadd.s32 1, %s945_s17   ;;  %s1322_s4 = sld [smem:[#allocation12_spill]] }
  0xdc   : > { %p19_p6 = scmp.ge.s32.totalorder %s22_s17, 4   ;;  %s1323_s14 = sld [smem:[#allocation14_spill]] }
  0xdd   : > { %s1324_s25 = sld [smem:[#allocation13_spill]]  ;;  %s1325_s12 = smov %s929_s13 }
  0xde   : > { %s1327_s15 = smov %s941_s16  ;;  %21 = sbr.rel (!%p19_p6) target bundleno = 11 (0xb), region = 101 }
  0xe1   : > { %s1326_s13 = smov %s1322_s4 }
  0xe3   : > { %s1328_s16 = smov %s1324_s25 }
  0xe5   :  { %539 = vsyncpa [#allocation3], 1 }
  0xe6   :  { %541 = vsyncpa [#allocation3 + $0x1], 1 }
  0xe7   :  { %542 = vsyncpa [#allocation6], 1 }
  0xe8   :  { %544 = vsyncpa [#allocation6 + $0x1], 1 }
  0xe9   :  { %545 = vsyncpa [#allocation4], 1 }
  0xea   :  { %547 = vsyncpa [#allocation4 + $0x1], 1 }

</bundles_post_ra>
